<compile_context>
chip_gen: v7x
topology: tpu7x:2x2x1
jax: 0.10.0
libtpu: 0.0.40
codegen_flags: <defaults>
</compile_context>

<pallas_src>
import jax
import jax.numpy as jnp
from jax import lax
from jax.experimental import pallas as pl
from jax.experimental.pallas import tpu as pltpu

NUM_GROUPS = 32
EPS = 1e-5
MIB = 1024 * 1024


# --------------------------------------------------------------------------
# Fused per-batch GroupNorm (stats + apply) + QKV projection
# --------------------------------------------------------------------------
def gn_qkv_fused_kernel(x_ref, gamma_ref, beta_ref, grp_ref, wqkv_ref, bqkv_ref,
                        qkv_ref):
    xc = x_ref[0].astype(jnp.float32)                 # (C, S) resident per batch
    c_dim, s_dim = xc.shape
    inv_n = 1.0 / float((c_dim // NUM_GROUPS) * s_dim)

    ssum = jnp.sum(xc, axis=1, keepdims=True)         # (C, 1)
    ssq = jnp.sum(xc * xc, axis=1, keepdims=True)     # (C, 1)
    # Group-broadcast sums via the (C, C) 0/1 membership matrix (exact).
    gsum = jnp.dot(grp_ref[...], ssum, preferred_element_type=jnp.float32)
    gsq = jnp.dot(grp_ref[...], ssq, preferred_element_type=jnp.float32)
    mean = gsum * inv_n
    # One-pass variance; clamp at 0 to guard against cancellation.
    # TODO(synk): switch to a Welford/centered merge if activations grow large.
    var = jnp.maximum(gsq * inv_n - mean * mean, 0.0)
    inv_std = lax.rsqrt(var + EPS)
    scale = gamma_ref[...] * inv_std                  # (C, 1)
    shift = beta_ref[...] - mean * scale

    xb = (xc * scale + shift).astype(jnp.bfloat16)    # GN-normalized, bf16 for MXU
    qkv = jnp.dot(wqkv_ref[...], xb,                  # (3C, C) @ (C, S)
                  preferred_element_type=jnp.float32)
    qkv = qkv + bqkv_ref[...]                         # (3C, 1) bias broadcast
    qkv_ref[0] = qkv.astype(qkv_ref.dtype)            # bf16 out


# --------------------------------------------------------------------------
# Fallback pass 1: GroupNorm statistics -> per-channel (scale, shift)
# --------------------------------------------------------------------------
def gn_stats_kernel(x_ref, gamma_ref, beta_ref, grp_ref,
                    scale_ref, shift_ref, ssum, ssq):
    si = pl.program_id(1)

    @pl.when(si == 0)
    def _():
        ssum[...] = jnp.zeros(ssum.shape, ssum.dtype)
        ssq[...] = jnp.zeros(ssq.shape, ssq.dtype)

    xc = x_ref[0].astype(jnp.float32)                 # (C, TS)
    ssum[...] += jnp.sum(xc, axis=1, keepdims=True)
    ssq[...] += jnp.sum(xc * xc, axis=1, keepdims=True)

    @pl.when(si == pl.num_programs(1) - 1)
    def _():
        c_dim, ts_dim = xc.shape
        gs = c_dim // NUM_GROUPS
        inv_n = 1.0 / (gs * ts_dim * pl.num_programs(1))
        gsum = jnp.dot(grp_ref[...], ssum[...], preferred_element_type=jnp.float32)
        gsq = jnp.dot(grp_ref[...], ssq[...], preferred_element_type=jnp.float32)
        mean = gsum * inv_n
        var = jnp.maximum(gsq * inv_n - mean * mean, 0.0)
        inv_std = lax.rsqrt(var + EPS)
        scale = gamma_ref[...] * inv_std
        shift = beta_ref[...] - mean * scale
        scale_ref[0] = scale
        shift_ref[0] = shift


# --------------------------------------------------------------------------
# Fallback pass 2: apply GroupNorm + fused QKV projection
# --------------------------------------------------------------------------
def gn_qkv_kernel(x_ref, scale_ref, shift_ref, wqkv_ref, bqkv_ref, qkv_ref):
    xc = x_ref[0].astype(jnp.float32)                 # (C, TS)
    xn = xc * scale_ref[0] + shift_ref[0]             # per-channel affine GN
    xb = xn.astype(jnp.bfloat16)
    qkv = jnp.dot(wqkv_ref[...], xb, preferred_element_type=jnp.float32)
    qkv = qkv + bqkv_ref[...]
    qkv_ref[0] = qkv.astype(qkv_ref.dtype)


# --------------------------------------------------------------------------
# Pass 3: flash attention (channel-major accumulator) + Wo + residual
# --------------------------------------------------------------------------
def flash_attn_kernel(q_ref, k_ref, v_ref, xres_ref, wo_ref, bo_ref,
                      o_ref, m_sc, l_sc, acc_sc):
    ki = pl.program_id(2)

    @pl.when(ki == 0)
    def _():
        m_sc[...] = jnp.full(m_sc.shape, -jnp.inf, m_sc.dtype)
        l_sc[...] = jnp.zeros(l_sc.shape, l_sc.dtype)
        acc_sc[...] = jnp.zeros(acc_sc.shape, acc_sc.dtype)

    q = q_ref[0]                                      # (C, TQ) bf16
    k = k_ref[0]                                      # (C, TK) bf16 (resident if TK==S)
    v = v_ref[0]                                      # (C, TK) bf16

    # scores[u, t] = sum_c k[c, u] * q[c, t]  -> (TK, TQ); 1/sqrt(C) already in Wq.
    s = lax.dot_general(k, q, (((0,), (0,)), ((), ())),
                        preferred_element_type=jnp.float32)        # (TK, TQ)

    m_prev = m_sc[...]                                             # (1, TQ)
    m_new = jnp.maximum(m_prev, jnp.max(s, axis=0, keepdims=True))
    alpha = jnp.exp(m_prev - m_new)                                # (1, TQ)
    p = jnp.exp(s - m_new)                                         # (TK, TQ)
    l_sc[...] = alpha * l_sc[...] + jnp.sum(p, axis=0, keepdims=True)
    # Channel-major accumulation: (C, TK) @ (TK, TQ) -> (C, TQ), native MXU layout.
    pv = jnp.dot(v, p.astype(jnp.bfloat16), preferred_element_type=jnp.float32)
    acc_sc[...] = alpha * acc_sc[...] + pv
    m_sc[...] = m_new

    @pl.when(ki == pl.num_programs(2) - 1)
    def _():
        inv_l = pl.reciprocal(l_sc[...], approx=True)              # EUP slot
        attn = (acc_sc[...] * inv_l).astype(jnp.bfloat16)          # (C, TQ)
        # Native [C, C] @ [C, TQ]; result is already channel-major -> store w/o relayout.
        out = jnp.dot(wo_ref[...], attn, preferred_element_type=jnp.float32)
        out = out + bo_ref[...]
        o_ref[0] = (out + xres_ref[0]).astype(o_ref.dtype)         # fused residual


# --------------------------------------------------------------------------
# Tile / VMEM planning helpers
# --------------------------------------------------------------------------
def _physical_vmem_bytes():
    try:
        info = pltpu.get_tpu_info()
        v = getattr(info, "vmem_capacity_bytes", None)
        if v:
            return int(v)
    except Exception:
        pass
    return 64 * MIB  # conservative default (v7x per-TensorCore VMEM)


def _vmem_limit(working_set_bytes, phys_vmem_bytes):
    """Explicit scoped-VMEM limit for a pallas_call: generous vs. plan, chip-safe."""
    return int(min(phys_vmem_bytes * 3 // 4, max(32 * MIB, 2 * working_set_bytes)))


def _pick_lane_tile(dim, preferred):
    """Largest multiple-of-128 divisor of `dim` that is <= preferred, else `dim`."""
    preferred = min(preferred, dim)
    if dim % 128 == 0 and preferred >= 128:
        t = (preferred // 128) * 128
        while dim % t:
            t -= 128
        return t
    return dim


def _shrink_lane_tile(dim, t):
    """Next smaller multiple-of-128 divisor of `dim` strictly below `t`, or None."""
    cand = ((min(t, dim) - 1) // 128) * 128
    while cand >= 128:
        if dim % cand == 0:
            return cand
        cand -= 128
    return None


def _fused_gn_working_set(c, s, x_itemsize):
    return (2 * (c * s * x_itemsize              # x block (double-buffered)
                 + 3 * c * s * 2                 # qkv output block (bf16)
                 + 3 * c * c * 2                 # Wqkv (bf16)
                 + c * c * 4                     # group-membership matrix
                 + 8 * c * 4)                    # gamma/beta/bias columns
            + c * s * 4)                         # f32 normalized-x intermediate


def _tiled_gn_working_set(c, ts, x_itemsize):
    return (2 * (c * ts * x_itemsize + 3 * c * ts * 2 + 3 * c * c * 2
                 + c * c * 4 + 8 * c * 4)
            + 4 * c * ts * 4)


def _attn_working_set(c, tq, tk, x_itemsize):
    return (2 * (c * tq * 2                      # Q block (bf16)
                 + 2 * c * tk * 2                # K + V blocks (bf16)
                 + c * tq * x_itemsize           # residual x block
                 + c * tq * x_itemsize           # output block
                 + c * c * 2                     # Wo (bf16)
                 + c * 4)                        # bo
            + c * tq * 4                         # accumulator scratch
            + 2 * tq * 4                         # running max / sum
            + tk * tq * 4)                       # f32 scores intermediate


# --------------------------------------------------------------------------
# Wrapper
# --------------------------------------------------------------------------
def vae_attention_block(x_nchw, gamma, beta, wq, bq, wk, bk, wv, bv, wo, bo,
                        *, tq=512, tk=None, ts=1024):
    n, c, h, w = x_nchw.shape
    assert c % NUM_GROUPS == 0, "GroupNorm(32, C) requires C % 32 == 0"
    s = h * w
    x = x_nchw.reshape(n, c, s)                       # free reshape, no transpose
    x_isz = jnp.dtype(x.dtype).itemsize

    phys_vmem = _physical_vmem_bytes()
    budget = max(24 * MIB, int(phys_vmem * 0.45))     # per-pass planning budget

    gs = c // NUM_GROUPS
    ch = jnp.arange(c) // gs
    grp = (ch[:, None] == ch[None, :]).astype(jnp.float32)   # (C, C) 0/1, built once

    gamma2 = gamma.reshape(c, 1).astype(jnp.float32)
    beta2 = beta.reshape(c, 1).astype(jnp.float32)

    inv_sqrt_c = 1.0 / float(c) ** 0.5
    wqkv_t = jnp.concatenate(
        [(wq * inv_sqrt_c).T, wk.T, wv.T], axis=0).astype(jnp.bfloat16)   # (3C, C)
    bqkv = jnp.concatenate(
        [bq * inv_sqrt_c, bk, bv]).reshape(3 * c, 1).astype(jnp.float32)  # (3C, 1)

    # ---- pass 1+2: GroupNorm + QKV ----
    fused_ws = _fused_gn_working_set(c, s, x_isz)
    if fused_ws <= budget:
        # Per-batch fused kernel: x read from HBM exactly once.
        qkv = pl.pallas_call(
            gn_qkv_fused_kernel,
            out_shape=jax.ShapeDtypeStruct((n, 3 * c, s), jnp.bfloat16),
            grid_spec=pltpu.PrefetchScalarGridSpec(
                num_scalar_prefetch=0,
                grid=(n,),
                in_specs=[
                    pl.BlockSpec((1, c, s), lambda b: (b, 0, 0)),
                    pl.BlockSpec((c, 1), lambda b: (0, 0)),
                    pl.BlockSpec((c, 1), lambda b: (0, 0)),
                    pl.BlockSpec((c, c), lambda b: (0, 0)),
                    pl.BlockSpec((3 * c, c), lambda b: (0, 0)),
                    pl.BlockSpec((3 * c, 1), lambda b: (0, 0)),
                ],
                out_specs=pl.BlockSpec((1, 3 * c, s), lambda b: (b, 0, 0))),
            compiler_params=pltpu.CompilerParams(
                dimension_semantics=("parallel",),
                vmem_limit_bytes=_vmem_limit(fused_ws, phys_vmem)),
        )(x, gamma2, beta2, grp, wqkv_t, bqkv)
    else:
        # Tiled two-pass fallback for very large S.
        ts_sel = _pick_lane_tile(s, ts)
        while _tiled_gn_working_set(c, ts_sel, x_isz) > budget:
            nxt = _shrink_lane_tile(s, ts_sel)
            if nxt is None:
                break
            ts_sel = nxt
        ws12 = _tiled_gn_working_set(c, ts_sel, x_isz)

        scale, shift = pl.pallas_call(
            gn_stats_kernel,
            out_shape=(jax.ShapeDtypeStruct((n, c, 1), jnp.float32),
                       jax.ShapeDtypeStruct((n, c, 1), jnp.float32)),
            grid_spec=pltpu.PrefetchScalarGridSpec(
                num_scalar_prefetch=0,
                grid=(n, s // ts_sel),
                in_specs=[
                    pl.BlockSpec((1, c, ts_sel), lambda b, si: (b, 0, si)),
                    pl.BlockSpec((c, 1), lambda b, si: (0, 0)),
                    pl.BlockSpec((c, 1), lambda b, si: (0, 0)),
                    pl.BlockSpec((c, c), lambda b, si: (0, 0)),
                ],
                out_specs=(pl.BlockSpec((1, c, 1), lambda b, si: (b, 0, 0)),
                           pl.BlockSpec((1, c, 1), lambda b, si: (b, 0, 0))),
                scratch_shapes=[pltpu.VMEM((c, 1), jnp.float32),
                                pltpu.VMEM((c, 1), jnp.float32)]),
            compiler_params=pltpu.CompilerParams(
                dimension_semantics=("parallel", "arbitrary"),
                vmem_limit_bytes=_vmem_limit(ws12, phys_vmem)),
        )(x, gamma2, beta2, grp)

        qkv = pl.pallas_call(
            gn_qkv_kernel,
            out_shape=jax.ShapeDtypeStruct((n, 3 * c, s), jnp.bfloat16),
            grid_spec=pltpu.PrefetchScalarGridSpec(
                num_scalar_prefetch=0,
                grid=(n, s // ts_sel),
                in_specs=[
                    pl.BlockSpec((1, c, ts_sel), lambda b, si: (b, 0, si)),
                    pl.BlockSpec((1, c, 1), lambda b, si: (b, 0, 0)),
                    pl.BlockSpec((1, c, 1), lambda b, si: (b, 0, 0)),
                    pl.BlockSpec((3 * c, c), lambda b, si: (0, 0)),
                    pl.BlockSpec((3 * c, 1), lambda b, si: (0, 0)),
                ],
                out_specs=pl.BlockSpec((1, 3 * c, ts_sel), lambda b, si: (b, 0, si))),
            compiler_params=pltpu.CompilerParams(
                dimension_semantics=("parallel", "parallel"),
                vmem_limit_bytes=_vmem_limit(ws12, phys_vmem)),
        )(x, scale, shift, wqkv_t, bqkv)

    # ---- pass 3: flash attention + Wo projection + residual ----
    wo_t = wo.T.astype(jnp.bfloat16)                  # (C_out, C_in)
    bo2 = bo.reshape(c, 1).astype(jnp.float32)

    # Q tile: large, but keep >= 2 Q tiles when possible so the "parallel" qi
    # axis can be split across v7x's two TensorCores even at batch 1.
    tq_sel = _pick_lane_tile(s, tq)
    if s % 128 == 0 and s >= 256 and tq_sel >= s:
        tq_sel = _pick_lane_tile(s, s // 2)

    # KV tile: prefer the full S (index_map depends only on b/ki, so with tk==S
    # the K/V blocks are DMA'd once per batch and never re-streamed per Q tile);
    # shrink only if the per-generation VMEM budget cannot hold the working set.
    tk_sel = _pick_lane_tile(s, s if tk is None else tk)
    while _attn_working_set(c, tq_sel, tk_sel, x_isz) > budget:
        nxt = _shrink_lane_tile(s, tk_sel)
        if nxt is None:
            break
        tk_sel = nxt
    ws3 = _attn_working_set(c, tq_sel, tk_sel, x_isz)
    # TODO(synk): for huge S where even tk=128 exceeds the budget, switch K/V to
    # memory_space=pl.ANY with a manual once-per-batch double-buffered DMA (P4).

    out = pl.pallas_call(
        flash_attn_kernel,
        out_shape=jax.ShapeDtypeStruct((n, c, s), x.dtype),
        grid_spec=pltpu.PrefetchScalarGridSpec(
            num_scalar_prefetch=0,
            grid=(n, s // tq_sel, s // tk_sel),
            in_specs=[
                # q / k / v are sublane-block slices of the same (N, 3C, S) array.
                pl.BlockSpec((1, c, tq_sel), lambda b, qi, ki: (b, 0, qi)),
                # K/V indices don't depend on qi -> no per-Q-tile re-fetch; with
                # tk == S they stay resident for the whole batch.
                pl.BlockSpec((1, c, tk_sel), lambda b, qi, ki: (b, 1, ki)),
                pl.BlockSpec((1, c, tk_sel), lambda b, qi, ki: (b, 2, ki)),
                pl.BlockSpec((1, c, tq_sel), lambda b, qi, ki: (b, 0, qi)),  # residual
                pl.BlockSpec((c, c), lambda b, qi, ki: (0, 0)),              # Wo^T
                pl.BlockSpec((c, 1), lambda b, qi, ki: (0, 0)),              # bo
            ],
            out_specs=pl.BlockSpec((1, c, tq_sel), lambda b, qi, ki: (b, 0, qi)),
            scratch_shapes=[pltpu.VMEM((1, tq_sel), jnp.float32),    # running max
                            pltpu.VMEM((1, tq_sel), jnp.float32),    # running sum
                            pltpu.VMEM((c, tq_sel), jnp.float32)]),  # acc (C-major)
        compiler_params=pltpu.CompilerParams(
            dimension_semantics=("parallel", "parallel", "arbitrary"),
            vmem_limit_bytes=_vmem_limit(ws3, phys_vmem)),
    )(qkv, qkv, qkv, x, wo_t, bo2)

    return out.reshape(n, c, h, w)


# --------------------------------------------------------------------------
# Pure-JAX reference (mirrors the PyTorch module exactly, all f32)
# --------------------------------------------------------------------------
def ref_forward(x, gamma, beta, wq, bq, wk, bk, wv, bv, wo, bo):
    n, c, h, w = x.shape
    xg = x.reshape(n, NUM_GROUPS, c // NUM_GROUPS, h, w)
    mean = xg.mean(axis=(2, 3, 4), keepdims=True)
    var = ((xg - mean) ** 2).mean(axis=(2, 3, 4), keepdims=True)
    xn = (xg - mean) / jnp.sqrt(var + EPS)
    xn = xn.reshape(n, c, h, w) * gamma[None, :, None, None] + beta[None, :, None, None]
    xs = jnp.transpose(xn.reshape(n, c, h * w), (0, 2, 1))        # (N, S, C)
    q = xs @ wq + bq
    k = xs @ wk + bk
    v = xs @ wv + bv
    scores = jnp.einsum('nsc,ntc->nst', q, k) / jnp.sqrt(jnp.float32(c))
    p = jax.nn.softmax(scores, axis=-1)
    out = jnp.einsum('nst,ntc->nsc', p, v) @ wo + bo
    return jnp.transpose(out, (0, 2, 1)).reshape(n, c, h, w) + x


if __name__ == "__main__":
    # C must be a multiple of 32; S = H*W = 256 exercises multiple Q tiles
    # (tq=128) with a fully-resident K/V block (tk=S) and the fused GN+QKV path.
    N, C, H, W = 2, 64, 16, 16

    key = jax.random.PRNGKey(0)
    ks = jax.random.split(key, 10)
    x = jax.random.normal(ks[0], (N, C, H, W), jnp.float32)

    # Weights in "y = x @ W + b" convention (pre-transposed from PyTorch).
    gamma = 1.0 + 0.1 * jax.random.normal(ks[1], (C,), jnp.float32)
    beta = 0.1 * jax.random.normal(ks[2], (C,), jnp.float32)
    wq = 0.05 * jax.random.normal(ks[3], (C, C), jnp.float32)
    wk = 0.05 * jax.random.normal(ks[4], (C, C), jnp.float32)
    wv = 0.05 * jax.random.normal(ks[5], (C, C), jnp.float32)
    wo = 0.05 * jax.random.normal(ks[6], (C, C), jnp.float32)
    bq = 0.05 * jax.random.normal(ks[7], (C,), jnp.float32)
    bk = 0.05 * jax.random.normal(ks[8], (C,), jnp.float32)
    bv = 0.05 * jax.random.normal(ks[9], (C,), jnp.float32)
    bo = jnp.zeros((C,), jnp.float32)

    y = vae_attention_block(x, gamma, beta, wq, bq, wk, bk, wv, bv, wo, bo)
    y = jax.block_until_ready(y)

    y_ref = ref_forward(x, gamma, beta, wq, bq, wk, bk, wv, bv, wo, bo)
    assert y.shape == (N, C, H, W)
    # bf16 MXU inputs (f32 accumulation) -> slightly looser tolerance than pure f32.
    assert jnp.allclose(y, y_ref, atol=2e-2, rtol=2e-2), "mismatch vs reference"

    print("KERNEL_OK")
</pallas_src>

<mosaic_0001>
module attributes {stable_mosaic.version = 11 : i64} {
  func.func @gn_qkv_fused_kernel(%arg0: i32, %arg1: memref<1x64x256xf32, #tpu.memory_space<vmem>>, %arg2: memref<64x1xf32, #tpu.memory_space<vmem>>, %arg3: memref<64x1xf32, #tpu.memory_space<vmem>>, %arg4: memref<64x64xf32, #tpu.memory_space<vmem>>, %arg5: memref<192x64xbf16, #tpu.memory_space<vmem>>, %arg6: memref<192x1xf32, #tpu.memory_space<vmem>>, %arg7: memref<1x192x256xbf16, #tpu.memory_space<vmem>>) attributes {dimension_semantics = [#tpu.dimension_semantics<parallel>], iteration_bounds = array<i64: 2>, scalar_prefetch = 0 : i64, scratch_operands = 0 : i64, tpu.core_type = #tpu.core_type<tc>, window_params = [{transform_indices = @transform_0, window_bounds = array<i64: 1, 64, 256>}, {pipeline_mode = #tpu.pipeline_mode<synchronous>, transform_indices = @transform_1, window_bounds = array<i64: 64, 1>}, {pipeline_mode = #tpu.pipeline_mode<synchronous>, transform_indices = @transform_2, window_bounds = array<i64: 64, 1>}, {pipeline_mode = #tpu.pipeline_mode<synchronous>, transform_indices = @transform_3, window_bounds = array<i64: 64, 64>}, {pipeline_mode = #tpu.pipeline_mode<synchronous>, transform_indices = @transform_4, window_bounds = array<i64: 192, 64>}, {pipeline_mode = #tpu.pipeline_mode<synchronous>, transform_indices = @transform_5, window_bounds = array<i64: 192, 1>}, {transform_indices = @transform_6, window_bounds = array<i64: 1, 192, 256>}]} {
    %c0 = arith.constant 0 : index
    %c0_0 = arith.constant 0 : index
    %c0_1 = arith.constant 0 : index
    %0 = vector.load %arg1[%c0, %c0_0, %c0_1] : memref<1x64x256xf32, #tpu.memory_space<vmem>>, vector<1x64x256xf32>
    %1 = vector.shape_cast %0 : vector<1x64x256xf32> to vector<64x256xf32>
    %cst = arith.constant dense<0.000000e+00> : vector<64xf32>
    %2 = vector.multi_reduction <add>, %1, %cst [1] : vector<64x256xf32> to vector<64xf32>
    %3 = vector.shape_cast %2 : vector<64xf32> to vector<64x1xf32>
    %4 = arith.mulf %1, %1 : vector<64x256xf32>
    %cst_2 = arith.constant dense<0.000000e+00> : vector<64xf32>
    %5 = vector.multi_reduction <add>, %4, %cst_2 [1] : vector<64x256xf32> to vector<64xf32>
    %6 = vector.shape_cast %5 : vector<64xf32> to vector<64x1xf32>
    %c0_3 = arith.constant 0 : index
    %c0_4 = arith.constant 0 : index
    %7 = vector.load %arg4[%c0_3, %c0_4] : memref<64x64xf32, #tpu.memory_space<vmem>>, vector<64x64xf32>
    %cst_5 = arith.constant dense<0.000000e+00> : vector<64x1xf32>
    %8 = tpu.matmul %7, %3, %cst_5 {dimension_numbers = #tpu.dot_dimension_numbers<[1], [0], [0], [1], [0, 0, 1, 1], [], []>} : vector<64x64xf32>, vector<64x1xf32>, vector<64x1xf32> -> vector<64x1xf32>
    %c0_6 = arith.constant 0 : index
    %c0_7 = arith.constant 0 : index
    %9 = vector.load %arg4[%c0_6, %c0_7] : memref<64x64xf32, #tpu.memory_space<vmem>>, vector<64x64xf32>
    %cst_8 = arith.constant dense<0.000000e+00> : vector<64x1xf32>
    %10 = tpu.matmul %9, %6, %cst_8 {dimension_numbers = #tpu.dot_dimension_numbers<[1], [0], [0], [1], [0, 0, 1, 1], [], []>} : vector<64x64xf32>, vector<64x1xf32>, vector<64x1xf32> -> vector<64x1xf32>
    %cst_9 = arith.constant 0.001953125 : f32
    %11 = vector.broadcast %cst_9 : f32 to vector<64x1xf32>
    %12 = arith.mulf %8, %11 : vector<64x1xf32>
    %cst_10 = arith.constant 0.001953125 : f32
    %13 = vector.broadcast %cst_10 : f32 to vector<64x1xf32>
    %14 = arith.mulf %10, %13 : vector<64x1xf32>
    %15 = arith.mulf %12, %12 : vector<64x1xf32>
    %16 = arith.subf %14, %15 : vector<64x1xf32>
    %cst_11 = arith.constant 0.000000e+00 : f32
    %17 = vector.broadcast %cst_11 : f32 to vector<64x1xf32>
    %18 = arith.maximumf %16, %17 : vector<64x1xf32>
    %cst_12 = arith.constant 9.99999974E-6 : f32
    %19 = vector.broadcast %cst_12 : f32 to vector<64x1xf32>
    %20 = arith.addf %18, %19 : vector<64x1xf32>
    %21 = math.rsqrt %20 : vector<64x1xf32>
    %c0_13 = arith.constant 0 : index
    %c0_14 = arith.constant 0 : index
    %22 = vector.load %arg2[%c0_13, %c0_14] : memref<64x1xf32, #tpu.memory_space<vmem>>, vector<64x1xf32>
    %23 = arith.mulf %22, %21 : vector<64x1xf32>
    %c0_15 = arith.constant 0 : index
    %c0_16 = arith.constant 0 : index
    %24 = vector.load %arg3[%c0_15, %c0_16] : memref<64x1xf32, #tpu.memory_space<vmem>>, vector<64x1xf32>
    %25 = arith.mulf %12, %23 : vector<64x1xf32>
    %26 = arith.subf %24, %25 : vector<64x1xf32>
    %27 = vector.broadcast %23 : vector<64x1xf32> to vector<64x256xf32>
    %28 = arith.mulf %1, %27 : vector<64x256xf32>
    %29 = vector.broadcast %26 : vector<64x1xf32> to vector<64x256xf32>
    %30 = arith.addf %28, %29 : vector<64x256xf32>
    %31 = arith.truncf %30 : vector<64x256xf32> to vector<64x256xbf16>
    %c0_17 = arith.constant 0 : index
    %c0_18 = arith.constant 0 : index
    %32 = vector.load %arg5[%c0_17, %c0_18] : memref<192x64xbf16, #tpu.memory_space<vmem>>, vector<192x64xbf16>
    %cst_19 = arith.constant dense<0.000000e+00> : vector<192x256xf32>
    %33 = tpu.matmul %32, %31, %cst_19 {dimension_numbers = #tpu.dot_dimension_numbers<[1], [0], [0], [1], [0, 0, 1, 1], [], []>} : vector<192x64xbf16>, vector<64x256xbf16>, vector<192x256xf32> -> vector<192x256xf32>
    %c0_20 = arith.constant 0 : index
    %c0_21 = arith.constant 0 : index
    %34 = vector.load %arg6[%c0_20, %c0_21] : memref<192x1xf32, #tpu.memory_space<vmem>>, vector<192x1xf32>
    %35 = vector.broadcast %34 : vector<192x1xf32> to vector<192x256xf32>
    %36 = arith.addf %33, %35 : vector<192x256xf32>
    %37 = arith.truncf %36 : vector<192x256xf32> to vector<192x256xbf16>
    %c0_22 = arith.constant 0 : index
    %c0_23 = arith.constant 0 : index
    %c0_24 = arith.constant 0 : index
    %38 = vector.load %arg7[%c0_22, %c0_23, %c0_24] : memref<1x192x256xbf16, #tpu.memory_space<vmem>>, vector<1x192x256xbf16>
    %39 = vector.shape_cast %38 : vector<1x192x256xbf16> to vector<192x256xbf16>
    %40 = vector.shape_cast %37 : vector<192x256xbf16> to vector<1x192x256xbf16>
    tpu.vector_store %arg7[%c0_22, %c0_23, %c0_24], %40 {strides = array<i32>} : memref<1x192x256xbf16, #tpu.memory_space<vmem>>, vector<1x192x256xbf16>,
    return
  }
  func.func @transform_0(%arg0: i32) -> (i32, i32, i32) {
    %c0_i32 = arith.constant 0 : i32
    %c0_i32_0 = arith.constant 0 : i32
    %c0_i32_1 = arith.constant 0 : i32
    return %arg0, %c0_i32, %c0_i32_0 : i32, i32, i32
  }
  func.func @transform_1(%arg0: i32) -> (i32, i32) {
    %c0_i32 = arith.constant 0 : i32
    %c0_i32_0 = arith.constant 0 : i32
    %c0_i32_1 = arith.constant 0 : i32
    return %c0_i32, %c0_i32_0 : i32, i32
  }
  func.func @transform_2(%arg0: i32) -> (i32, i32) {
    %c0_i32 = arith.constant 0 : i32
    %c0_i32_0 = arith.constant 0 : i32
    %c0_i32_1 = arith.constant 0 : i32
    return %c0_i32, %c0_i32_0 : i32, i32
  }
  func.func @transform_3(%arg0: i32) -> (i32, i32) {
    %c0_i32 = arith.constant 0 : i32
    %c0_i32_0 = arith.constant 0 : i32
    %c0_i32_1 = arith.constant 0 : i32
    return %c0_i32, %c0_i32_0 : i32, i32
  }
  func.func @transform_4(%arg0: i32) -> (i32, i32) {
    %c0_i32 = arith.constant 0 : i32
    %c0_i32_0 = arith.constant 0 : i32
    %c0_i32_1 = arith.constant 0 : i32
    return %c0_i32, %c0_i32_0 : i32, i32
  }
  func.func @transform_5(%arg0: i32) -> (i32, i32) {
    %c0_i32 = arith.constant 0 : i32
    %c0_i32_0 = arith.constant 0 : i32
    %c0_i32_1 = arith.constant 0 : i32
    return %c0_i32, %c0_i32_0 : i32, i32
  }
  func.func @transform_6(%arg0: i32) -> (i32, i32, i32) {
    %c0_i32 = arith.constant 0 : i32
    %c0_i32_0 = arith.constant 0 : i32
    %c0_i32_1 = arith.constant 0 : i32
    return %arg0, %c0_i32, %c0_i32_0 : i32, i32, i32
  }
}

</mosaic_0001>

<bundles_post_ra>
// kernel: tpu_custom_call.1
= control target key start
LH: loop header
LB: loop body
LE: loop exit
PB: predicated region body
PF: predicated region fallthrough
CT: control target
= control target key end

     0   :  { %11 = vsyncpa [#allocation3], 0  ;;  %s2396_s0 = inlined_call_operand.vmem [shape: f32[2,64,256], index: 0, kind: input, shape index: {}]   ;;  %s2397_s1 = inlined_call_operand.vmem [shape: f32[64,1], index: 1, kind: input, shape index: {}]   ;;  %s2398_s2 = inlined_call_operand.vmem [shape: f32[64,1], index: 2, kind: input, shape index: {}]   ;;  %s2399_s3 = inlined_call_operand.vmem [shape: f32[64,64], index: 3, kind: input, shape index: {}]   ;;  %s2400_s4 = inlined_call_operand.vmem [shape: bf16[192,64], index: 4, kind: input, shape index: {}]   ;;  %s2401_s5 = inlined_call_operand.vmem [shape: f32[192,1], index: 5, kind: input, shape index: {}]   ;;  %s2402_s6 = inlined_call_operand.hbm [shape: bf16[2,192,256], index: 6, kind: output, shape index: {}]  }
   0x1   :  { %13 = vsyncpa [#allocation3 + $0x1], 0  ;;  %s1854_s21 = smov 0   ;;  %s1856_s22 = smov 0  }
   0x2   :  { %s1858_s23 = smov 0   ;;  %s1860_s24 = smov 0  }
   0x3 LB: > { %s1875_s25 = sadd.s32 4294967295, %s1813_s24   ;;  %s1451_s26 = sadd.s32 4294967294, %s1813_s24   ;;  %s1813_s24 = sphi %s1860_s24, %s2408_s24   ;;  %s1809_s23 = sphi %s1858_s23, %s2407_s23   ;;  %s1805_s22 = sphi %s1856_s22, %s2406_s22   ;;  %s1801_s21 = sphi %s1854_s21, %s2405_s21  }
   0x4   : > { %s1879_s27 = sadd.s32 1, %s1813_s24   ;;  %s157_s28 = sadd.s32 1, %s1809_s23 }
   0x5   : > { %s154_s29 = ssub.s32 %s1813_s24, %s1879_s27  ;;  %p167_p0 = scmp.ne.s32.totalorder %s1809_s23, %s1805_s22 }
   0x6   : > { %p155_p1 = scmp.eq.s32.totalorder %s154_s29, 0  ;;  %p168_p2 = scmp.eq.s32.totalorder %s1875_s25, 1 }
   0x7   : > { %p173_p3 = scmp.ne.s32.totalorder %s1805_s22, %s1801_s21  ;;  %p174_p4 = scmp.eq.s32.totalorder %s1451_s26, 1 }
   0x8   : > { %s1890_s30 = scalar_select %p155_p1, %s1809_s23, %s157_s28  }
   0x9   : > { %p1892_p5 = por %p168_p2, %p167_p0  ;;  %p1896_p6 = por %p174_p4, %p173_p3 }
   0xa   : > { %p1454_p7 = scmp.ge.s32.totalorder %s1813_s24, 1  ;;  %p215_p8 = scmp.lt.s32.totalorder %s1813_s24, 3 }
   0xc   : > { %p216_p9 = pnand %p1454_p7, %p215_p8 }
   0xd   : > { %p245_p10 = scmp.lt.s32.totalorder (!%p216_p9), %s1875_s25, 1  ;;  %v331_v48 = vld [vmem:[%s2399_s3] sm:$0xff] (!%p216_p9)  ;;  %vm339_vm0 = vcmask (!%p216_p9), 523264   ;;  %s242_s14 = sand.u32 (!%p216_p9), 1, %s1805_s22  }
   0xe   : > { %219 = sbr.rel (%p216_p9) target bundleno = 888 (0x378), region = 44  ;;  %1597 = vmatprep.mubr.msk.f32.mxu0 (!%p216_p9), %vm339_vm0, %v331_v48  ;;  %1625 = vmatprep.mubr.msk.f32.mxu1 (!%p216_p9), %vm339_vm0, %v331_v48  ;;  %s2355_s26 = scalar_lea.sflag (!%p216_p9), [#allocation3], %s242_s14 }
   0xf   : > { %s1677_s15 = smul.u32 (!%p216_p9), 192, %s242_s14  ;;  %s1816_s29 = smov (!%p216_p9), [#allocation2]  }
  0x10   : > { %s1678_s17 = smul.u32 (!%p216_p9), 3072, %s1875_s25 }
  0x11   : > { %s2302_s16 = scalar_lea.vmem (!%p216_p9), [#allocation2], %s1677_s15 }
  0x12   : > { %s1389_s18 = sshll.u32 (!%p216_p9), %s2302_s16, 4  ;;  %s2345_s20 = scalar_lea.hbm (!%p216_p9), %s2402_s6, %s1678_s17  ;;  %s2349_s18 = int_to_ptr.vmem [resolvable:$true] %s1389_s18 }
  0x13   : > { %s1751_s28 = scalar_lea.vmem (!%p216_p9), %s2349_s18, 3072 }
  0x14   : > { %p1752_p11 = scmp.ne.s32.totalorder (!%p216_p9), %s2349_s18, %s1751_s28 }
  0x15   : > { %s246_s9 = scalar_select %p245_p10, %s1875_s25, 1 }
  0x16   : > { %p1753_p12 = pnand %p1752_p11, %p1892_p5 }
  0x17   : > { %s1524_s10 = sshll.u32 %s246_s9, 7  ;;  %s1755_s9 = sshll.u32 %s1816_s29, 4  ;;  %s1756_s9 = int_to_ptr.vmem [resolvable:$false] %s1755_s9 }
  0x18   : > { %s1907_s13 = scalar_lea.vmem %s2396_s0, %s1524_s10  ;;  %p1754_p13 = pneg %p1753_p12 }
  0x19   : > { %v1910_v0 = vld [vmem:[%s1907_s13 + $0x30] sm:$0xff]  ;;  %v1913_v1 = vld [vmem:[%s1907_s13 + $0x38] sm:$0xff]  ;;  %v1916_v2 = vld [vmem:[%s1907_s13] sm:$0xff]  ;;  %s1757_s10 = scalar_lea.vmem %s1756_s9, 6144  ;;  %p1758_p0 = scmp.lt.s32.totalorder %s2349_s18, %s1756_s9 }
  0x1a   : > { %v276_v3 = vadd.f32 %v1913_v1, %v1910_v0  ;;  %v1921_v4 = vld [vmem:[%s1907_s13 + $0x8] sm:$0xff]  ;;  %v291_v5 = vmul.f32 %v1916_v2, %v1916_v2  ;;  %v1926_v6 = vld [vmem:[%s1907_s13 + $0x10] sm:$0xff]  ;;  %v1929_v7 = vld [vmem:[%s1907_s13 + $0x18] sm:$0xff]  ;;  %v297_v17 = vmul.f32 %v1910_v0, %v1910_v0  ;;  %v298_v18 = vmul.f32 %v1913_v1, %v1913_v1  ;;  %p1759_p1 = scmp.lt.s32.totalorder %s1757_s10, %s1751_s28 }
  0x1b   : > { %v267_v8 = vadd.f32 %v1921_v4, %v1916_v2  ;;  %v292_v9 = vmul.f32 %v1921_v4, %v1921_v4  ;;  %v293_v10 = vmul.f32 %v1926_v6, %v1926_v6  ;;  %v294_v11 = vmul.f32 %v1929_v7, %v1929_v7  ;;  %v1942_v14 = vld [vmem:[%s1907_s13 + $0x20] sm:$0xff]  ;;  %v1945_v15 = vld [vmem:[%s1907_s13 + $0x28] sm:$0xff]  ;;  %v1958_v24 = vld [vmem:[%s1907_s13 + $0x50] sm:$0xff] }
  0x1c   : > { %277 = vadd.xlane.f32.xlu1 %v276_v3  ;;  %v270_v13 = vadd.f32 %v1929_v7, %v1926_v6  ;;  %v273_v19 = vadd.f32 %v1945_v15, %v1942_v14  ;;  %v295_v20 = vmul.f32 %v1942_v14, %v1942_v14  ;;  %v296_v21 = vmul.f32 %v1945_v15, %v1945_v15  ;;  %v1961_v25 = vld [vmem:[%s1907_s13 + $0x58] sm:$0xff]  ;;  %v1964_v26 = vld [vmem:[%s1907_s13 + $0x40] sm:$0xff]  ;;  %v1967_v27 = vld [vmem:[%s1907_s13 + $0x48] sm:$0xff]  ;;  %p1760_p2 = por %p1759_p1, %p1758_p0 }
  0x1d   : > { %268 = vadd.xlane.f32.xlu0 %v267_v8  ;;  %v307_v12 = vadd.f32 %v292_v9, %v291_v5  ;;  %v310_v16 = vadd.f32 %v294_v11, %v293_v10  ;;  %v316_v22 = vadd.f32 %v298_v18, %v297_v17  ;;  %v282_v28 = vadd.f32 %v1961_v25, %v1958_v24  ;;  %v1982_v36 = vld [vmem:[%s1907_s13 + $0x70] sm:$0xff]  ;;  %v1985_v37 = vld [vmem:[%s1907_s13 + $0x78] sm:$0xff]  ;;  %v1988_v38 = vld [vmem:[%s1907_s13 + $0x60] sm:$0xff] }
  0x1e   : > { %v313_v23 = vadd.f32 %v296_v21, %v295_v20  ;;  %v301_v29 = vmul.f32 %v1958_v24, %v1958_v24  ;;  %v302_v30 = vmul.f32 %v1961_v25, %v1961_v25  ;;  %v279_v31 = vadd.f32 %v1967_v27, %v1964_v26  ;;  %v1991_v39 = vld [vmem:[%s1907_s13 + $0x68] sm:$0xff]  ;;  %v333_v18 = vld [vmem:[%s2399_s3 + $0x10] sm:$0xff]  ;;  %v335_v20 = vld [vmem:[%s2399_s3 + $0x20] sm:$0xff]  ;;  %p1761_p3 = pnand %p1760_p2, %p1754_p13 }
  0x1f   : > { %v299_v32 = vmul.f32 %v1964_v26, %v1964_v26  ;;  %v300_v33 = vmul.f32 %v1967_v27, %v1967_v27  ;;  %v288_v40 = vadd.f32 %v1985_v37, %v1982_v36  ;;  %v305_v41 = vmul.f32 %v1982_v36, %v1982_v36  ;;  %v336_v21 = vld [vmem:[%s2399_s3 + $0x28] sm:$0xff] }
  0x20   : > { %308 = vadd.xlane.f32.xlu1 %v307_v12  ;;  %v322_v34 = vadd.f32 %v302_v30, %v301_v29  ;;  %v306_v42 = vmul.f32 %v1985_v37, %v1985_v37  ;;  %v285_v43 = vadd.f32 %v1991_v39, %v1988_v38  ;;  %v303_v44 = vmul.f32 %v1988_v38, %v1988_v38 }
  0x21   : > { %271 = vadd.xlane.f32.xlu0 %v270_v13  ;;  %v319_v35 = vadd.f32 %v300_v33, %v299_v32  ;;  %v304_v45 = vmul.f32 %v1991_v39, %v1991_v39 }
  0x22   : > { %v328_v46 = vadd.f32 %v306_v42, %v305_v41 }
  0x23   : > { %v325_v47 = vadd.f32 %v304_v45, %v303_v44 }
  0x24   : > { %311 = vadd.xlane.f32.xlu1 %v310_v16  ;;  %v332_v16 = vld [vmem:[%s2399_s3 + $0x8] sm:$0xff] }
  0x25   : > { %274 = vadd.xlane.f32.xlu0 %v273_v19  ;;  %v334_v19 = vld [vmem:[%s2399_s3 + $0x18] sm:$0xff] }
  0x28   : > { %317 = vadd.xlane.f32.xlu1 %v316_v22  ;;  %v337_v22 = vld [vmem:[%s2399_s3 + $0x30] sm:$0xff] }
  0x29   : > { %314 = vadd.xlane.f32.xlu0 %v313_v23  ;;  %v338_v23 = vld [vmem:[%s2399_s3 + $0x38] sm:$0xff] }
  0x2c   : > { %283 = vadd.xlane.f32.xlu1 %v282_v28  ;;  %v1815_v28 = vmov 0  }
  0x2d   : > { %280 = vadd.xlane.f32.xlu0 %v279_v31  ;;  %1721 = vset.pattern.permute.xlu1 %v1815_v28 }
  0x2e   : > { %1722 = vset.pattern.permute.xlu0 %v1815_v28 }
  0x30   : > { %323 = vadd.xlane.f32.xlu1 %v322_v34 }
  0x31   : > { %320 = vadd.xlane.f32.xlu0 %v319_v35 }
  0x34   : > { %289 = vadd.xlane.f32.xlu1 %v288_v40 }
  0x35   : > { %286 = vadd.xlane.f32.xlu0 %v285_v43 }
  0x38   : > { %329 = vadd.xlane.f32.xlu1 %v328_v46 }
  0x39   : > { %326 = vadd.xlane.f32.xlu0 %v325_v47 }
  0xa9   : > { %v278_v49 = vpop.xlane.xlu1 %277 }
  0xaa   : > { %v269_v50 = vpop.xlane.xlu0 %268 }
  0xad   : > { %v309_v51 = vpop.xlane.xlu1 %308 }
  0xae   : > { %v272_v52 = vpop.xlane.xlu0 %271 }
  0xaf   : > { %v1637_v53 = vpack.c.bf16 %v272_v52, %v269_v50 }
  0xb1   : > { %1638 = vmatprep.subr.bf16.mxu0 %v1637_v53  ;;  %v312_v54 = vpop.xlane.xlu1 %311 }
  0xb2   : > { %v1653_v55 = vpack.c.bf16 %v312_v54, %v309_v51  ;;  %1640 = vmatpush3.bf16.msra.mxu0 %v1637_v53  ;;  %v275_v56 = vpop.xlane.xlu0 %274 }
  0xb3   : > { %v1641_v57 = vpack.c.bf16 %v278_v49, %v275_v56 }
  0xb4   : > { %1654 = vmatprep.subr.bf16.mxu1 %v1653_v55 }
  0xb5   : > { %1642 = vmatprep.subr.bf16.mxu0 %v1641_v57  ;;  %1656 = vmatpush3.bf16.msra.mxu1 %v1653_v55  ;;  %v318_v58 = vpop.xlane.xlu1 %317 }
  0xb6   : > { %1644 = vmatpush3.bf16.msra.mxu0 %v1641_v57  ;;  %v315_v59 = vpop.xlane.xlu0 %314 }
  0xb7   : > { %v1657_v60 = vpack.c.bf16 %v318_v58, %v315_v59 }
  0xb9   : > { %1658 = vmatprep.subr.bf16.mxu1 %v1657_v60  ;;  %v284_v61 = vpop.xlane.xlu1 %283 }
  0xba   : > { %1660 = vmatpush3.bf16.msra.mxu1 %v1657_v60  ;;  %v281_v62 = vpop.xlane.xlu0 %280 }
  0xbb   : > { %v1645_v63 = vpack.c.bf16 %v284_v61, %v281_v62 }
  0xbd   : > { %1646 = vmatprep.subr.bf16.mxu0 %v1645_v63  ;;  %v324_v3 = vpop.xlane.xlu1 %323 }
  0xbe   : > { %1648 = vmatpush3.bf16.msra.mxu0 %v1645_v63  ;;  %v321_v5 = vpop.xlane.xlu0 %320 }
  0xbf   : > { %v1661_v8 = vpack.c.bf16 %v324_v3, %v321_v5 }
  0xc1   : > { %1662 = vmatprep.subr.bf16.mxu1 %v1661_v8  ;;  %v290_v9 = vpop.xlane.xlu1 %289 }
  0xc2   : > { %1664 = vmatpush3.bf16.msra.mxu1 %v1661_v8  ;;  %v287_v10 = vpop.xlane.xlu0 %286 }
  0xc3   : > { %v1649_v11 = vpack.c.bf16 %v290_v9, %v287_v10 }
  0xc5   : > { %1650 = vmatprep.subr.bf16.mxu0 %v1649_v11  ;;  %v330_v12 = vpop.xlane.xlu1 %329 }
  0xc6   : > { %1652 = vmatpush3.bf16.msra.mxu0 %v1649_v11  ;;  %v327_v13 = vpop.xlane.xlu0 %326 }
  0xc7   : > { %v1665_v17 = vpack.c.bf16 %v330_v12, %v327_v13 }
  0xc9   : > { %1666 = vmatprep.subr.bf16.mxu1 %v1665_v17  ;;  %1598 = vmatmul.mubr.msk.f32.vlgmr.msra.gmra.mrb[0].mxu0 %vm339_vm0, %v332_v16 }
  0xca   : > { %1668 = vmatpush3.bf16.msra.mxu1 %v1665_v17  ;;  %1600 = vmatprep.mubr.msk.f32.mxu0 %vm339_vm0, %v333_v18 }
  0xcd   : > { %1626 = vmatmul.mubr.msk.f32.vlgmr.msra.gmra.mrb[0].mxu1 %vm339_vm0, %v332_v16  ;;  %1601 = vmatmul.mubr.msk.f32.gmra.mrb[2].mxu0 %vm339_vm0, %v334_v19 }
  0xce   : > { %1628 = vmatprep.mubr.msk.f32.mxu1 %vm339_vm0, %v333_v18  ;;  %1603 = vmatprep.mubr.msk.f32.mxu0 %vm339_vm0, %v335_v20 }
  0xd1   : > { %1629 = vmatmul.mubr.msk.f32.gmra.mrb[2].mxu1 %vm339_vm0, %v334_v19  ;;  %1604 = vmatmul.mubr.msk.f32.gmra.mrb[4].mxu0 %vm339_vm0, %v336_v21 }
  0xd2   : > { %1631 = vmatprep.mubr.msk.f32.mxu1 %vm339_vm0, %v335_v20  ;;  %1606 = vmatprep.mubr.msk.f32.mxu0 %vm339_vm0, %v337_v22 }
  0xd5   : > { %1632 = vmatmul.mubr.msk.f32.gmra.mrb[4].mxu1 %vm339_vm0, %v336_v21  ;;  %1607 = vmatmul.mubr.msk.f32.gmra.mrb[6].mxu0 %vm339_vm0, %v338_v23 }
  0xd6   : > { %1634 = vmatprep.mubr.msk.f32.mxu1 %vm339_vm0, %v337_v22  ;;  %1086 = vmatprep.mubr.bf16.mxu0 %v1815_v28 }
  0xd9   : > { %1635 = vmatmul.mubr.msk.f32.gmra.mrb[6].mxu1 %vm339_vm0, %v338_v23 }
  0xda   : > { %1146 = vmatprep.mubr.bf16.mxu1 %v1815_v28 }
 0x19c   : > { %v1599_v29 = vpop.f32.mrb[0].mxu0 }
 0x19d   : > { %v2049_v30 = vmul.f32 0.001953125, %v1599_v29  ;;  %v430_v31 = vpop.f32.mrb[1].mxu0 }
 0x19e   : > { %v2051_v32 = vmul.f32 0.001953125, %v430_v31 }
 0x19f   : > { %v591_v33 = vmul.f32 %v2049_v30, %v2049_v30 }
 0x1a0   : > { %v590_v34 = vmul.f32 %v2051_v32, %v2051_v32  ;;  %v1627_v35 = vpop.f32.mrb[0].mxu1  ;;  %v1602_v40 = vpop.f32.mrb[2].mxu0 }
 0x1a1   : > { %v583_v41 = vmul.f32 0.001953125, %v1627_v35  ;;  %v535_v42 = vpop.f32.mrb[1].mxu1  ;;  %v2057_v43 = vmul.f32 0.001953125, %v1602_v40  ;;  %v440_v44 = vpop.f32.mrb[3].mxu0 }
 0x1a2   : > { %v582_v45 = vmul.f32 0.001953125, %v535_v42  ;;  %v2059_v46 = vmul.f32 0.001953125, %v440_v44 }
 0x1a3   : > { %v599_v47 = vsub.f32 %v583_v41, %v591_v33  ;;  %v593_v48 = vmul.f32 %v2057_v43, %v2057_v43 }
 0x1a4   : > { %v598_v49 = vsub.f32 %v582_v45, %v590_v34  ;;  %v592_v50 = vmul.f32 %v2059_v46, %v2059_v46  ;;  %v1630_v51 = vpop.f32.mrb[2].mxu1  ;;  %v1605_v52 = vpop.f32.mrb[4].mxu0 }
 0x1a5   : > { %v607_v53 = vmax.f32 %v599_v47, 0.0  ;;  %v585_v54 = vmul.f32 0.001953125, %v1630_v51  ;;  %v545_v55 = vpop.f32.mrb[3].mxu1  ;;  %v2065_v56 = vmul.f32 0.001953125, %v1605_v52  ;;  %v450_v57 = vpop.f32.mrb[5].mxu0  ;;  %v631_v51 = vld [vmem:[%s2397_s1 + $0x8] sm:$0xff] }
 0x1a6   : > { %v606_v58 = vmax.f32 %v598_v49, 0.0  ;;  %v584_v59 = vmul.f32 0.001953125, %v545_v55  ;;  %v2067_v60 = vmul.f32 0.001953125, %v450_v57 }
 0x1a7   : > { %v615_v61 = vadd.f32 1e-05, %v607_v53  ;;  %v601_v62 = vsub.f32 %v585_v54, %v593_v48  ;;  %v595_v63 = vmul.f32 %v2065_v56, %v2065_v56  ;;  %v630_v53 = vld [vmem:[%s2397_s1] sm:$0xff] }
 0x1a8   : > { %v614_v3 = vadd.f32 1e-05, %v606_v58  ;;  %v600_v5 = vsub.f32 %v584_v59, %v592_v50  ;;  %v594_v8 = vmul.f32 %v2067_v60, %v2067_v60  ;;  %v1633_v9 = vpop.f32.mrb[4].mxu1  ;;  %v1608_v10 = vpop.f32.mrb[6].mxu0 }
 0x1a9   : > { %1735 = vrsqrt.f32 %v615_v61  ;;  %v609_v11 = vmax.f32 %v601_v62, 0.0  ;;  %v587_v12 = vmul.f32 0.001953125, %v1633_v9  ;;  %v555_v13 = vpop.f32.mrb[5].mxu1  ;;  %v2073_v16 = vmul.f32 0.001953125, %v1608_v10  ;;  %v460_v17 = vpop.f32.mrb[7].mxu0  ;;  %v647_v62 = vld [vmem:[%s2398_s2 + $0x8] sm:$0xff] }
 0x1aa   : > { %1737 = vrsqrt.f32 %v614_v3  ;;  %v608_v18 = vmax.f32 %v600_v5, 0.0  ;;  %v586_v19 = vmul.f32 0.001953125, %v555_v13  ;;  %v2075_v20 = vmul.f32 0.001953125, %v460_v17  ;;  %v632_v5 = vld [vmem:[%s2397_s1 + $0x10] sm:$0xff]  ;;  %v635_v13 = vld [vmem:[%s2397_s1 + $0x28] sm:$0xff] }
 0x1ab   : > { %v617_v21 = vadd.f32 1e-05, %v609_v11  ;;  %v603_v22 = vsub.f32 %v587_v12, %v595_v63  ;;  %v597_v23 = vmul.f32 %v2073_v16, %v2073_v16  ;;  %v633_v63 = vld [vmem:[%s2397_s1 + $0x18] sm:$0xff] }
 0x1ac   : > { %v616_v29 = vadd.f32 1e-05, %v608_v18  ;;  %v602_v31 = vsub.f32 %v586_v19, %v594_v8  ;;  %v596_v33 = vmul.f32 %v2075_v20, %v2075_v20  ;;  %v1636_v34 = vpop.f32.mrb[6].mxu1 }
 0x1ad   : > { %1739 = vrsqrt.f32 %v617_v21  ;;  %v611_v35 = vmax.f32 %v603_v22, 0.0  ;;  %v589_v40 = vmul.f32 0.001953125, %v1636_v34  ;;  %v565_v41 = vpop.f32.mrb[7].mxu1 }
 0x1ae   : > { %1741 = vrsqrt.f32 %v616_v29  ;;  %v610_v42 = vmax.f32 %v602_v31, 0.0  ;;  %v588_v44 = vmul.f32 0.001953125, %v565_v41  ;;  %v651_v29 = vld [vmem:[%s2398_s2 + $0x28] sm:$0xff] }
 0x1af   : > { %v619_v45 = vadd.f32 1e-05, %v611_v35  ;;  %v605_v47 = vsub.f32 %v589_v40, %v597_v23  ;;  %v646_v23 = vld [vmem:[%s2398_s2] sm:$0xff] }
 0x1b0   : > { %v618_v48 = vadd.f32 1e-05, %v610_v42  ;;  %v604_v49 = vsub.f32 %v588_v44, %v596_v33 }
 0x1b1   : > { %1743 = vrsqrt.f32 %v619_v45  ;;  %v613_v50 = vmax.f32 %v605_v47, 0.0 }
 0x1b2   : > { %1745 = vrsqrt.f32 %v618_v48  ;;  %v612_v52 = vmax.f32 %v604_v49, 0.0  ;;  %v653_v49 = vld [vmem:[%s2398_s2 + $0x38] sm:$0xff] }
 0x1b3   : > { %v1736_v54 = vpop.eup %1735  ;;  %v621_v55 = vadd.f32 1e-05, %v613_v50 }
 0x1b4   : > { %v1738_v57 = vpop.eup %1737  ;;  %v620_v58 = vadd.f32 1e-05, %v612_v52  ;;  %v639_v59 = vmul.f32 %v1736_v54, %v631_v51  ;;  %v648_v51 = vld [vmem:[%s2398_s2 + $0x10] sm:$0xff]  ;;  %v817_v52 = vld [vmem:[%s2401_s5 + $0x18] sm:$0xff]  ;;  %v819_v54 = vld [vmem:[%s2401_s5 + $0x28] sm:$0xff] }
 0x1b5   : > { %1747 = vrsqrt.f32 %v621_v55  ;;  %v638_v61 = vmul.f32 %v1738_v57, %v630_v53  ;;  %v650_v53 = vld [vmem:[%s2398_s2 + $0x20] sm:$0xff]  ;;  %v821_v57 = vld [vmem:[%s2401_s5 + $0x38] sm:$0xff] }
 0x1b6   : > { %1749 = vrsqrt.f32 %v620_v58  ;;  %677 = vperm.xlu1 %1721, %v639_v59   ;;  %v655_v3 = vmul.f32 %v639_v59, %v2049_v30  ;;  %v634_v30 = vld [vmem:[%s2397_s1 + $0x20] sm:$0xff]  ;;  %v652_v58 = vld [vmem:[%s2398_s2 + $0x30] sm:$0xff]  ;;  %v823_v59 = vld [vmem:[%s2401_s5 + $0x48] sm:$0xff] }
 0x1b7   : > { %v1740_v8 = vpop.eup %1739  ;;  %672 = vperm.xlu0 %1722, %v638_v61   ;;  %v654_v9 = vmul.f32 %v638_v61, %v2051_v32 }
 0x1b8   : > { %v1742_v10 = vpop.eup %1741  ;;  %v663_v11 = vsub.f32 %v647_v62, %v655_v3  ;;  %v641_v12 = vmul.f32 %v1740_v8, %v633_v63  ;;  %v825_v62 = vld [vmem:[%s2401_s5 + $0x58] sm:$0xff]  ;;  %v814_v63 = vld [vmem:[%s2401_s5] sm:$0xff]  ;;  %v827_v3 = vld [vmem:[%s2401_s5 + $0x68] sm:$0xff] }
 0x1b9   : > { %v640_v17 = vmul.f32 %v1742_v10, %v632_v5  ;;  %v662_v41 = vsub.f32 %v646_v23, %v654_v9  ;;  %v816_v5 = vld [vmem:[%s2401_s5 + $0x10] sm:$0xff]  ;;  %v829_v8 = vld [vmem:[%s2401_s5 + $0x78] sm:$0xff]  ;;  %v818_v9 = vld [vmem:[%s2401_s5 + $0x20] sm:$0xff] }
 0x1ba   : > { %733 = vperm.xlu1 %1721, %v663_v11   ;;  %v657_v18 = vmul.f32 %v641_v12, %v2057_v43  ;;  %v637_v43 = vld [vmem:[%s2397_s1 + $0x38] sm:$0xff]  ;;  %v831_v10 = vld [vmem:[%s2401_s5 + $0x88] sm:$0xff]  ;;  %v820_v11 = vld [vmem:[%s2401_s5 + $0x30] sm:$0xff] }
 0x1bb   : > { %v1744_v19 = vpop.eup %1743  ;;  %v656_v21 = vmul.f32 %v640_v17, %v2059_v46  ;;  %v636_v46 = vld [vmem:[%s2397_s1 + $0x30] sm:$0xff]  ;;  %v834_v23 = vld [vmem:[%s2401_s5 + $0xa0] sm:$0xff] }
 0x1bc   : > { %v1746_v22 = vpop.eup %1745  ;;  %v643_v32 = vmul.f32 %v1744_v19, %v635_v13  ;;  %v822_v13 = vld [vmem:[%s2401_s5 + $0x40] sm:$0xff] }
 0x1bd   : > { %v642_v31 = vmul.f32 %v1746_v22, %v634_v30  ;;  %v837_v30 = vld [vmem:[%s2401_s5 + $0xb8] sm:$0xff]  ;;  %v826_v19 = vld [vmem:[%s2401_s5 + $0x60] sm:$0xff] }
 0x1be   : > { %687 = vperm.xlu1 %1721, %v641_v12   ;;  %697 = vperm.xlu0 %1722, %v643_v32   ;;  %v659_v33 = vmul.f32 %v643_v32, %v2065_v56  ;;  %v649_v56 = vld [vmem:[%s2398_s2 + $0x18] sm:$0xff]  ;;  %v830_v22 = vld [vmem:[%s2401_s5 + $0x80] sm:$0xff]  ;;  %v832_v32 = vld [vmem:[%s2401_s5 + $0x90] sm:$0xff] }
 0x1bf   : > { %v1748_v34 = vpop.eup %1747  ;;  %v658_v35 = vmul.f32 %v642_v31, %v2067_v60  ;;  %v665_v60 = vsub.f32 %v649_v56, %v657_v18  ;;  %v833_v12 = vld [vmem:[%s2401_s5 + $0x98] sm:$0xff]  ;;  %v824_v18 = vld [vmem:[%s2401_s5 + $0x50] sm:$0xff] }
 0x1c0   : > { %v1750_v40 = vpop.eup %1749  ;;  %v667_v42 = vsub.f32 %v651_v29, %v659_v33  ;;  %v645_v44 = vmul.f32 %v1748_v34, %v637_v43  ;;  %v836_v29 = vld [vmem:[%s2401_s5 + $0xb0] sm:$0xff] }
 0x1c1   : > { %v644_v45 = vmul.f32 %v1750_v40, %v636_v46  ;;  %v666_v55 = vsub.f32 %v650_v53, %v658_v35 }
 0x1c2   : > { %728 = vperm.xlu1 %1721, %v662_v41   ;;  %753 = vperm.xlu0 %1722, %v667_v42   ;;  %v661_v47 = vmul.f32 %v645_v44, %v2073_v16  ;;  %v815_v16 = vld [vmem:[%s2401_s5 + $0x8] sm:$0xff] }
 0x1c3   : > { %v660_v48 = vmul.f32 %v644_v45, %v2075_v20  ;;  %v664_v20 = vsub.f32 %v648_v51, %v656_v21  ;;  %v828_v21 = vld [vmem:[%s2401_s5 + $0x70] sm:$0xff] }
 0x1c4   : > { %v669_v50 = vsub.f32 %v653_v49, %v661_v47 }
 0x1c5   : > { %v668_v61 = vsub.f32 %v652_v58, %v660_v48 }
 0x1c6   : > { %682 = vperm.xlu1 %1721, %v640_v17   ;;  %707 = vperm.xlu0 %1722, %v645_v44   ;;  %v835_v17 = vld [vmem:[%s2401_s5 + $0xa8] sm:$0xff] }
 0x1ca   : > { %743 = vperm.xlu1 %1721, %v665_v60   ;;  %763 = vperm.xlu0 %1722, %v669_v50  }
 0x1ce   : > { %738 = vperm.xlu1 %1721, %v664_v20   ;;  %845 = vperm.xlu0 %1722, %v815_v16  }
 0x1d2   : > { %692 = vperm.xlu1 %1721, %v642_v31   ;;  %855 = vperm.xlu0 %1722, %v817_v52  }
 0x1d6   : > { %748 = vperm.xlu1 %1721, %v666_v55   ;;  %865 = vperm.xlu0 %1722, %v819_v54  }
 0x1da   : > { %875 = vperm.xlu0 %1722, %v821_v57   ;;  %702 = vperm.xlu1 %1721, %v644_v45  }
 0x1de   : > { %885 = vperm.xlu0 %1722, %v823_v59   ;;  %758 = vperm.xlu1 %1721, %v668_v61  }
 0x1e2   : > { %895 = vperm.xlu0 %1722, %v825_v62   ;;  %840 = vperm.xlu1 %1721, %v814_v63  }
 0x1e6   : > { %905 = vperm.xlu0 %1722, %v827_v3   ;;  %850 = vperm.xlu1 %1721, %v816_v5  }
 0x1ea   : > { %915 = vperm.xlu0 %1722, %v829_v8   ;;  %860 = vperm.xlu1 %1721, %v818_v9  }
 0x1ee   : > { %925 = vperm.xlu0 %1722, %v831_v10   ;;  %870 = vperm.xlu1 %1721, %v820_v11  }
 0x1f2   : > { %935 = vperm.xlu0 %1722, %v833_v12   ;;  %880 = vperm.xlu1 %1721, %v822_v13  }
 0x1f6   : > { %945 = vperm.xlu0 %1722, %v835_v17   ;;  %890 = vperm.xlu1 %1721, %v824_v18  }
 0x1fa   : > { %955 = vperm.xlu0 %1722, %v837_v30   ;;  %900 = vperm.xlu1 %1721, %v826_v19  }
 0x1fe   : > { %910 = vperm.xlu1 %1721, %v828_v21  }
 0x202   : > { %920 = vperm.xlu1 %1721, %v830_v22  }
 0x206   : > { %930 = vperm.xlu1 %1721, %v832_v32   ;;  %v1727_v32 = vld [vmem:[%s2400_s4 + $0x10] sm:$0xff]  }
 0x20a   : > { %940 = vperm.xlu1 %1721, %v834_v23   ;;  %v1728_v23 = vld [vmem:[%s2400_s4 + $0x40] sm:$0xff]  }
 0x20e   : > { %950 = vperm.xlu1 %1721, %v836_v29   ;;  %v1729_v29 = vld [vmem:[%s2400_s4 + $0x18] sm:$0xff]  }
 0x235   : > { %v678_v43 = vpop.permute.xlu1 %677 }
 0x236   : > { %v673_v33 = vpop.permute.xlu0 %672  ;;  %v712_v34 = vmul.f32 %v678_v43, %v1926_v6  ;;  %v713_v35 = vmul.f32 %v678_v43, %v1929_v7  ;;  %v1730_v43 = vld [vmem:[%s2400_s4 + $0x48] sm:$0xff]  }
 0x237   : > { %v710_v40 = vmul.f32 %v673_v33, %v1916_v2  ;;  %v711_v41 = vmul.f32 %v673_v33, %v1921_v4  ;;  %v1732_v33 = vld [vmem:[%s2400_s4 + $0x50] sm:$0xff]  }
 0x239   : > { %v734_v31 = vpop.permute.xlu1 %733 }
 0x23a   : > { %v768_v44 = vadd.f32 %v734_v31, %v712_v34  ;;  %v769_v45 = vadd.f32 %v734_v31, %v713_v35  ;;  %v1731_v31 = vld [vmem:[%s2400_s4 + $0x20] sm:$0xff]   ;;  %v1734_v34 = vld [vmem:[%s2400_s4 + $0x58] sm:$0xff]  }
 0x23d   : > { %v688_v46 = vpop.permute.xlu1 %687  ;;  %v698_v50 = vpop.permute.xlu0 %697 }
 0x23e   : > { %v716_v7 = vmul.f32 %v688_v46, %v1910_v0  ;;  %v717_v2 = vmul.f32 %v688_v46, %v1913_v1  ;;  %v720_v61 = vmul.f32 %v698_v50, %v1958_v24  ;;  %v721_v62 = vmul.f32 %v698_v50, %v1961_v25  ;;  %v1733_v46 = vld [vmem:[%s2400_s4 + $0x28] sm:$0xff]  }
 0x241   : > { %v729_v42 = vpop.permute.xlu1 %728  ;;  %v754_v55 = vpop.permute.xlu0 %753 }
 0x242   : > { %v766_v47 = vadd.f32 %v729_v42, %v710_v40  ;;  %v767_v48 = vadd.f32 %v729_v42, %v711_v41  ;;  %v776_v63 = vadd.f32 %v754_v55, %v720_v61  ;;  %v777_v3 = vadd.f32 %v754_v55, %v721_v62 }
 0x244   : > { %v782_v56 = vpack.c.bf16 %v768_v44, %v766_v47  ;;  %v783_v49 = vpack.c.bf16 %v769_v45, %v767_v48 }
 0x245   : > { %v683_v60 = vpop.permute.xlu1 %682 }
 0x246   : > { %1054 = vmatprep.subr.bf16.mxu0 %v783_v49  ;;  %1669 = vmatprep.subr.bf16.mxu1 %v783_v49  ;;  %v714_v4 = vmul.f32 %v683_v60, %v1942_v14  ;;  %v715_v51 = vmul.f32 %v683_v60, %v1945_v15  ;;  %v708_v14 = vpop.permute.xlu0 %707 }
 0x247   : > { %1055 = vmatpush1.bf16.msra.mxu0 %v782_v56  ;;  %1673 = vmatpush1.bf16.msra.mxu1 %v782_v56  ;;  %v724_v24 = vmul.f32 %v708_v14, %v1982_v36  ;;  %v725_v25 = vmul.f32 %v708_v14, %v1985_v37  ;;  %v1723_v36 = vld [vmem:[%s2400_s4] sm:$0xff]   ;;  %v1724_v37 = vld [vmem:[%s2400_s4 + $0x30] sm:$0xff]  }
 0x249   : > { %v744_v6 = vpop.permute.xlu1 %743 }
 0x24a   : > { %v772_v20 = vadd.f32 %v744_v6, %v716_v7  ;;  %v773_v52 = vadd.f32 %v744_v6, %v717_v2  ;;  %v764_v12 = vpop.permute.xlu0 %763 }
 0x24b   : > { %v780_v17 = vadd.f32 %v764_v12, %v724_v24  ;;  %v781_v18 = vadd.f32 %v764_v12, %v725_v25 }
 0x24d   : > { %v739_v16 = vpop.permute.xlu1 %738 }
 0x24e   : > { %v770_v53 = vadd.f32 %v739_v16, %v714_v4  ;;  %v771_v54 = vadd.f32 %v739_v16, %v715_v51  ;;  %v846_v35 = vpop.permute.xlu0 %845 }
 0x250   : > { %v784_v57 = vpack.c.bf16 %v772_v20, %v770_v53  ;;  %v785_v58 = vpack.c.bf16 %v773_v52, %v771_v54 }
 0x251   : > { %v693_v59 = vpop.permute.xlu1 %692 }
 0x252   : > { %1056 = vmatprep.subr.bf16.mxu0 %v785_v58  ;;  %1670 = vmatprep.subr.bf16.mxu1 %v785_v58  ;;  %v718_v0 = vmul.f32 %v693_v59, %v1964_v26  ;;  %v719_v1 = vmul.f32 %v693_v59, %v1967_v27  ;;  %v856_v41 = vpop.permute.xlu0 %855 }
 0x253   : > { %1057 = vmatpush1.bf16.msra.mxu0 %v784_v57  ;;  %1674 = vmatpush1.bf16.msra.mxu1 %v784_v57 }
 0x255   : > { %v749_v15 = vpop.permute.xlu1 %748 }
 0x256   : > { %v774_v5 = vadd.f32 %v749_v15, %v718_v0  ;;  %v775_v8 = vadd.f32 %v749_v15, %v719_v1  ;;  %v2283_v44 = vpop.permute.xlu0 %865 }
 0x258   : > { %v786_v9 = vpack.c.bf16 %v776_v63, %v774_v5  ;;  %v787_v10 = vpack.c.bf16 %v777_v3, %v775_v8 }
 0x259   : > { %v703_v11 = vpop.permute.xlu1 %702 }
 0x25a   : > { %1058 = vmatprep.subr.bf16.mxu0 %v787_v10  ;;  %1671 = vmatprep.subr.bf16.mxu1 %v787_v10  ;;  %v722_v26 = vmul.f32 %v703_v11, %v1988_v38  ;;  %v723_v27 = vmul.f32 %v703_v11, %v1991_v39  ;;  %v1725_v38 = vld [vmem:[%s2400_s4 + $0x8] sm:$0xff]   ;;  %v1726_v39 = vld [vmem:[%s2400_s4 + $0x38] sm:$0xff]   ;;  %v2287_v45 = vpop.permute.xlu0 %875 }
 0x25b   : > { %1059 = vmatpush1.bf16.msra.mxu0 %v786_v9  ;;  %1675 = vmatpush1.bf16.msra.mxu1 %v786_v9 }
 0x25d   : > { %v759_v13 = vpop.permute.xlu1 %758 }
 0x25e   : > { %v778_v30 = vadd.f32 %v759_v13, %v722_v26  ;;  %v779_v19 = vadd.f32 %v759_v13, %v723_v27  ;;  %v2291_v48 = vpop.permute.xlu0 %885 }
 0x260   : > { %v788_v21 = vpack.c.bf16 %v780_v17, %v778_v30  ;;  %v789_v22 = vpack.c.bf16 %v781_v18, %v779_v19 }
 0x261   : > { %v841_v40 = vpop.permute.xlu1 %840 }
 0x262   : > { %1060 = vmatprep.subr.bf16.mxu0 %v789_v22  ;;  %1672 = vmatprep.subr.bf16.mxu1 %v789_v22  ;;  %v2295_v49 = vpop.permute.xlu0 %895 }
 0x263   : > { %1061 = vmatpush1.bf16.msra.mxu0 %v788_v21  ;;  %1676 = vmatpush1.bf16.msra.mxu1 %v788_v21 }
 0x265   : > { %v851_v42 = vpop.permute.xlu1 %850 }
 0x266   : > { %1485 = vmatmul.mubr.msk.bf16.vlgmr.msra.gmra.mrb[8].mxu0 %vm339_vm0, %v1723_v36  ;;  %1491 = vmatmul.mubr.msk.bf16.vlgmr.msra.gmra.mrb[8].mxu1 %vm339_vm0, %v1724_v37  ;;  %v906_v50 = vpop.permute.xlu0 %905 }
 0x267   : > { %1096 = vmatprep.mubr.bf16.mxu0 %v1815_v28  ;;  %1156 = vmatprep.mubr.bf16.mxu1 %v1815_v28 }
 0x26a   : > { %v916_v3 = vpop.permute.xlu0 %915 }
 0x26e   : > { %1486 = vmatmul.mubr.msk.bf16.gmra.mrb[12].mxu0 %vm339_vm0, %v1725_v38  ;;  %1492 = vmatmul.mubr.msk.bf16.gmra.mrb[12].mxu1 %vm339_vm0, %v1726_v39 }
 0x26f   : > { %1106 = vmatprep.mubr.bf16.mxu0 %v1815_v28  ;;  %1166 = vmatprep.mubr.bf16.mxu1 %v1815_v28 }
 0x276   : > { %1487 = vmatmul.mubr.msk.bf16.gmra.mrb[16].mxu0 %vm339_vm0, %v1727_v32  ;;  %1493 = vmatmul.mubr.msk.bf16.gmra.mrb[16].mxu1 %vm339_vm0, %v1728_v23  ;;  %v926_v32 = vpop.permute.xlu0 %925 }
 0x277   : > { %1116 = vmatprep.mubr.bf16.mxu0 %v1815_v28  ;;  %1176 = vmatprep.mubr.bf16.mxu1 %v1815_v28 }
 0x27e   : > { %1488 = vmatmul.mubr.msk.bf16.gmra.mrb[20].mxu0 %vm339_vm0, %v1729_v29  ;;  %1494 = vmatmul.mubr.msk.bf16.gmra.mrb[20].mxu1 %vm339_vm0, %v1730_v43 }
 0x27f   : > { %1126 = vmatprep.mubr.bf16.mxu0 %v1815_v28  ;;  %1186 = vmatprep.mubr.bf16.mxu1 %v1815_v28 }
 0x286   : > { %1489 = vmatmul.mubr.msk.bf16.gmra.mrb[24].mxu0 %vm339_vm0, %v1731_v31  ;;  %1495 = vmatmul.mubr.msk.bf16.gmra.mrb[24].mxu1 %vm339_vm0, %v1732_v33 }
 0x287   : > { %1136 = vmatprep.mubr.bf16.mxu0 %v1815_v28  ;;  %1196 = vmatprep.mubr.bf16.mxu1 %v1815_v28  ;;  %v2285_v28 = vpop.permute.xlu1 %860 }
 0x28b   : > { %v2289_v47 = vpop.permute.xlu1 %870 }
 0x28e   : > { %1490 = vmatmul.mubr.msk.bf16.gmra.mrb[28].mxu0 %vm339_vm0, %v1733_v46  ;;  %1496 = vmatmul.mubr.msk.bf16.gmra.mrb[28].mxu1 %vm339_vm0, %v1734_v34 }
 0x28f   : > { %v2293_v56 = vpop.permute.xlu1 %880 }
 0x293   : > { %v2297_v60 = vpop.permute.xlu1 %890 }
 0x297   : > { %v901_v6 = vpop.permute.xlu1 %900 }
 0x29b   : > { %v911_v5 = vpop.permute.xlu1 %910 }
 0x29f   : > { %v921_v23 = vpop.permute.xlu1 %920 }
 0x339   : > { %v1088_v7 = vpop.f32.mrb[8].mxu0  ;;  %v1148_v2 = vpop.f32.mrb[8].mxu1 }
 0x33a   : > { %v1089_v4 = vadd.f32 %v1088_v7, %v841_v40  ;;  %v1149_v51 = vadd.f32 %v1148_v2, %v901_v6  ;;  %v1090_v16 = vpop.f32.mrb[9].mxu0  ;;  %v1150_v20 = vpop.f32.mrb[9].mxu1 }
 0x33b   : > { %v1091_v52 = vadd.f32 %v1090_v16, %v841_v40  ;;  %v1151_v53 = vadd.f32 %v1150_v20, %v901_v6  ;;  %v1092_v54 = vpop.f32.mrb[10].mxu0  ;;  %v1152_v55 = vpop.f32.mrb[10].mxu1 }
 0x33c   : > { %v1093_v57 = vadd.f32 %v1092_v54, %v846_v35  ;;  %v1153_v58 = vadd.f32 %v1152_v55, %v906_v50  ;;  %v1094_v59 = vpop.f32.mrb[11].mxu0  ;;  %v1154_v61 = vpop.f32.mrb[11].mxu1 }
 0x33d   : > { %v1525_v62 = vpack.c.bf16 %v1091_v52, %v1089_v4  ;;  %v1537_v0 = vpack.c.bf16 %v1151_v53, %v1149_v51  ;;  %v1095_v1 = vadd.f32 %v1094_v59, %v846_v35  ;;  %v1155_v14 = vadd.f32 %v1154_v61, %v906_v50  ;;  %v931_v54 = vpop.permute.xlu1 %930 }
 0x33f   : > { %1351 = vst [vmem:[%s2302_s16] sm:$0xff] %v1525_v62  ;;  %1363 = vst [vmem:[%s2302_s16 + $0x60] sm:$0xff] %v1537_v0  ;;  %v1526_v15 = vpack.c.bf16 %v1095_v1, %v1093_v57  ;;  %v1538_v63 = vpack.c.bf16 %v1155_v14, %v1153_v58 }
 0x341   : > { %1352 = vst [vmem:[%s2302_s16 + $0x8] sm:$0xff] %v1526_v15  ;;  %1364 = vst [vmem:[%s2302_s16 + $0x68] sm:$0xff] %v1538_v63  ;;  %v1098_v8 = vpop.f32.mrb[12].mxu0  ;;  %v1158_v9 = vpop.f32.mrb[12].mxu1 }
 0x342   : > { %v1099_v10 = vadd.f32 %v1098_v8, %v851_v42  ;;  %v1159_v11 = vadd.f32 %v1158_v9, %v911_v5  ;;  %v1100_v24 = vpop.f32.mrb[13].mxu0  ;;  %v1160_v25 = vpop.f32.mrb[13].mxu1 }
 0x343   : > { %v1101_v12 = vadd.f32 %v1100_v24, %v851_v42  ;;  %v1161_v26 = vadd.f32 %v1160_v25, %v911_v5  ;;  %v1102_v27 = vpop.f32.mrb[14].mxu0  ;;  %v1162_v13 = vpop.f32.mrb[14].mxu1 }
 0x344   : > { %v1103_v17 = vadd.f32 %v1102_v27, %v856_v41  ;;  %v1163_v18 = vadd.f32 %v1162_v13, %v916_v3  ;;  %v1104_v30 = vpop.f32.mrb[15].mxu0  ;;  %v1164_v19 = vpop.f32.mrb[15].mxu1 }
 0x345   : > { %v1527_v21 = vpack.c.bf16 %v1101_v12, %v1099_v10  ;;  %v1539_v22 = vpack.c.bf16 %v1161_v26, %v1159_v11  ;;  %v1105_v36 = vadd.f32 %v1104_v30, %v856_v41  ;;  %v1165_v37 = vadd.f32 %v1164_v19, %v916_v3  ;;  %v941_v12 = vpop.permute.xlu1 %940 }
 0x347   : > { %1353 = vst [vmem:[%s2302_s16 + $0x10] sm:$0xff] %v1527_v21  ;;  %1365 = vst [vmem:[%s2302_s16 + $0x70] sm:$0xff] %v1539_v22  ;;  %v1528_v38 = vpack.c.bf16 %v1105_v36, %v1103_v17  ;;  %v1540_v39 = vpack.c.bf16 %v1165_v37, %v1163_v18 }
 0x349   : > { %1354 = vst [vmem:[%s2302_s16 + $0x18] sm:$0xff] %v1528_v38  ;;  %1366 = vst [vmem:[%s2302_s16 + $0x78] sm:$0xff] %v1540_v39  ;;  %v1108_v29 = vpop.f32.mrb[16].mxu0  ;;  %v1168_v43 = vpop.f32.mrb[16].mxu1 }
 0x34a   : > { %v1109_v31 = vadd.f32 %v1108_v29, %v2285_v28  ;;  %v1169_v33 = vadd.f32 %v1168_v43, %v921_v23  ;;  %v1110_v46 = vpop.f32.mrb[17].mxu0  ;;  %v1170_v34 = vpop.f32.mrb[17].mxu1 }
 0x34b   : > { %v1111_v35 = vadd.f32 %v1110_v46, %v2285_v28  ;;  %v1171_v40 = vadd.f32 %v1170_v34, %v921_v23  ;;  %v1112_v41 = vpop.f32.mrb[18].mxu0  ;;  %v1172_v42 = vpop.f32.mrb[18].mxu1 }
 0x34c   : > { %v1113_v50 = vadd.f32 %v1112_v41, %v2283_v44  ;;  %v1173_v6 = vadd.f32 %v1172_v42, %v926_v32  ;;  %v1114_v7 = vpop.f32.mrb[19].mxu0  ;;  %v1174_v2 = vpop.f32.mrb[19].mxu1 }
 0x34d   : > { %v1529_v4 = vpack.c.bf16 %v1111_v35, %v1109_v31  ;;  %v1541_v51 = vpack.c.bf16 %v1171_v40, %v1169_v33  ;;  %v1115_v16 = vadd.f32 %v1114_v7, %v2283_v44  ;;  %v1175_v20 = vadd.f32 %v1174_v2, %v926_v32  ;;  %v936_v28 = vpop.permute.xlu0 %935  ;;  %v951_v46 = vpop.permute.xlu1 %950 }
 0x34f   : > { %1355 = vst [vmem:[%s2302_s16 + $0x20] sm:$0xff] %v1529_v4  ;;  %1367 = vst [vmem:[%s2302_s16 + $0x80] sm:$0xff] %v1541_v51  ;;  %v1530_v52 = vpack.c.bf16 %v1115_v16, %v1113_v50  ;;  %v1542_v53 = vpack.c.bf16 %v1175_v20, %v1173_v6 }
 0x351   : > { %1356 = vst [vmem:[%s2302_s16 + $0x28] sm:$0xff] %v1530_v52  ;;  %1368 = vst [vmem:[%s2302_s16 + $0x88] sm:$0xff] %v1542_v53  ;;  %v1118_v55 = vpop.f32.mrb[20].mxu0  ;;  %v1178_v57 = vpop.f32.mrb[20].mxu1 }
 0x352   : > { %v1119_v58 = vadd.f32 %v1118_v55, %v2289_v47  ;;  %v1179_v59 = vadd.f32 %v1178_v57, %v931_v54  ;;  %v1120_v61 = vpop.f32.mrb[21].mxu0  ;;  %v1180_v62 = vpop.f32.mrb[21].mxu1 }
 0x353   : > { %v1121_v44 = vadd.f32 %v1120_v61, %v2289_v47  ;;  %v1181_v0 = vadd.f32 %v1180_v62, %v931_v54  ;;  %v1122_v1 = vpop.f32.mrb[22].mxu0  ;;  %v1182_v14 = vpop.f32.mrb[22].mxu1 }
 0x354   : > { %v1123_v15 = vadd.f32 %v1122_v1, %v2287_v45  ;;  %v1183_v63 = vadd.f32 %v1182_v14, %v936_v28  ;;  %v1124_v3 = vpop.f32.mrb[23].mxu0  ;;  %v1184_v5 = vpop.f32.mrb[23].mxu1 }
 0x355   : > { %v1531_v8 = vpack.c.bf16 %v1121_v44, %v1119_v58  ;;  %v1543_v9 = vpack.c.bf16 %v1181_v0, %v1179_v59  ;;  %v1125_v10 = vadd.f32 %v1124_v3, %v2287_v45  ;;  %v1185_v11 = vadd.f32 %v1184_v5, %v936_v28  ;;  %v946_v47 = vpop.permute.xlu0 %945 }
 0x357   : > { %1357 = vst [vmem:[%s2302_s16 + $0x30] sm:$0xff] %v1531_v8  ;;  %1369 = vst [vmem:[%s2302_s16 + $0x90] sm:$0xff] %v1543_v9  ;;  %v1532_v24 = vpack.c.bf16 %v1125_v10, %v1123_v15  ;;  %v1544_v25 = vpack.c.bf16 %v1185_v11, %v1183_v63 }
 0x359   : > { %1358 = vst [vmem:[%s2302_s16 + $0x38] sm:$0xff] %v1532_v24  ;;  %1370 = vst [vmem:[%s2302_s16 + $0x98] sm:$0xff] %v1544_v25  ;;  %v1128_v26 = vpop.f32.mrb[24].mxu0  ;;  %v1188_v27 = vpop.f32.mrb[24].mxu1 }
 0x35a   : > { %v1129_v13 = vadd.f32 %v1128_v26, %v2293_v56  ;;  %v1189_v17 = vadd.f32 %v1188_v27, %v941_v12  ;;  %v1130_v18 = vpop.f32.mrb[25].mxu0  ;;  %v1190_v30 = vpop.f32.mrb[25].mxu1 }
 0x35b   : > { %v1131_v45 = vadd.f32 %v1130_v18, %v2293_v56  ;;  %v1191_v19 = vadd.f32 %v1190_v30, %v941_v12  ;;  %v1132_v21 = vpop.f32.mrb[26].mxu0  ;;  %v1192_v22 = vpop.f32.mrb[26].mxu1 }
 0x35c   : > { %v1133_v36 = vadd.f32 %v1132_v21, %v2291_v48  ;;  %v1193_v37 = vadd.f32 %v1192_v22, %v946_v47  ;;  %v1134_v38 = vpop.f32.mrb[27].mxu0  ;;  %v1194_v39 = vpop.f32.mrb[27].mxu1 }
 0x35d   : > { %v1533_v32 = vpack.c.bf16 %v1131_v45, %v1129_v13  ;;  %v1545_v23 = vpack.c.bf16 %v1191_v19, %v1189_v17  ;;  %v1135_v29 = vadd.f32 %v1134_v38, %v2291_v48  ;;  %v1195_v43 = vadd.f32 %v1194_v39, %v946_v47  ;;  %v956_v33 = vpop.permute.xlu0 %955 }
 0x35f   : > { %1359 = vst [vmem:[%s2302_s16 + $0x40] sm:$0xff] %v1533_v32  ;;  %1371 = vst [vmem:[%s2302_s16 + $0xa0] sm:$0xff] %v1545_v23  ;;  %v1534_v31 = vpack.c.bf16 %v1135_v29, %v1133_v36  ;;  %v1546_v56 = vpack.c.bf16 %v1195_v43, %v1193_v37 }
 0x361   : > { %1360 = vst [vmem:[%s2302_s16 + $0x48] sm:$0xff] %v1534_v31  ;;  %1372 = vst [vmem:[%s2302_s16 + $0xa8] sm:$0xff] %v1546_v56  ;;  %v1138_v34 = vpop.f32.mrb[28].mxu0  ;;  %v1198_v35 = vpop.f32.mrb[28].mxu1 }
 0x362   : > { %v1139_v40 = vadd.f32 %v1138_v34, %v2297_v60  ;;  %v1199_v41 = vadd.f32 %v1198_v35, %v951_v46  ;;  %v1140_v42 = vpop.f32.mrb[29].mxu0  ;;  %v1200_v50 = vpop.f32.mrb[29].mxu1 }
 0x363   : > { %v1141_v48 = vadd.f32 %v1140_v42, %v2297_v60  ;;  %v1201_v6 = vadd.f32 %v1200_v50, %v951_v46  ;;  %v1142_v7 = vpop.f32.mrb[30].mxu0  ;;  %v1202_v2 = vpop.f32.mrb[30].mxu1 }
 0x364   : > { %v1143_v4 = vadd.f32 %v1142_v7, %v2295_v49  ;;  %v1203_v51 = vadd.f32 %v1202_v2, %v956_v33  ;;  %v1144_v16 = vpop.f32.mrb[31].mxu0  ;;  %v1204_v20 = vpop.f32.mrb[31].mxu1 }
 0x365   : > { %v1535_v52 = vpack.c.bf16 %v1141_v48, %v1139_v40  ;;  %v1547_v53 = vpack.c.bf16 %v1201_v6, %v1199_v41  ;;  %v1145_v28 = vadd.f32 %v1144_v16, %v2295_v49  ;;  %v1205_v54 = vadd.f32 %v1204_v20, %v956_v33 }
 0x367   : > { %1361 = vst [vmem:[%s2302_s16 + $0x50] sm:$0xff] %v1535_v52  ;;  %1373 = vst [vmem:[%s2302_s16 + $0xb0] sm:$0xff] %v1547_v53  ;;  %v1536_v60 = vpack.c.bf16 %v1145_v28, %v1143_v4  ;;  %v1548_v55 = vpack.c.bf16 %v1205_v54, %v1203_v51 }
 0x369   : > { %1362 = vst [vmem:[%s2302_s16 + $0x58] sm:$0xff] %v1536_v60  ;;  %1374 = vst [vmem:[%s2302_s16 + $0xb8] sm:$0xff] %v1548_v55 }
 0x36a   : > { %1764 = shalt.err (!%p1761_p3)
}
 0x36b   : > { %s1765_s11 = scalar_lea.hbm %s2345_s20, 3072  ;;  %s1769_s14 = scalar_lea.hbm %s2402_s6, 6144 }
 0x36c   : > { %p1766_p4 = scmp.ne.s32.totalorder %s2345_s20, %s1765_s11  ;;  %p1770_p9 = scmp.lt.u32.totalorder %s2345_s20, %s2402_s6 }
 0x36d   : > { %p1771_p10 = scmp.lt.u32.totalorder %s1769_s14, %s1765_s11  ;;  %p1773_p12 = scmp.lt.u32.totalorder %s1765_s11, %s2345_s20 }
 0x36e   : > { %p1767_p7 = pnand %p1766_p4, %p1892_p5 }
 0x36f   : > { %p1772_p11 = por %p1771_p10, %p1770_p9 }
 0x370   : > { %p1768_p8 = pneg %p1767_p7 }
 0x371   : > { %p1774_p13 = por %p1773_p12, %p1772_p11 }
 0x373   : > { %p1775_p0 = pnand %p1774_p13, %p1768_p8 }
 0x375   : > { %1778 = shalt.err (!%p1775_p0)
}
 0x376   : > { %s1817_s17 = smov 128   ;;  %s1818_s25 = smov 8  }
 0x377   : > { %1679 = dma.vmem_to_hbm [thread:$0]  (%p1892_p5), %s2349_s18, 3072, %s2345_s20, %s2355_s26, %s1817_s17, %s1817_s17, %s1818_s25  }
 0x378 PF: > { %p1685_p1 = scmp.ge.s32.totalorder %s1813_s24, 2  ;;  %s1404_s19 = sand.u32 1, %s1801_s21  }
 0x379   : > { %s1405_s28 = scalar_lea.sflag [#allocation3], %s1404_s19 }
 0x37a   : > { %p1682_p2 = pnand %p1685_p1, %p1896_p6 }
 0x37c   : > { %1796 = dma.done.wait (!%p1682_p2), %s1405_s28, 3072  }
 0x37d   : > { %1798 = vsyncadd (!%p1682_p2), %s1405_s28, 4294964224  ;;  %p16_p3 = scmp.ge.s32.totalorder %s1879_s27, 4   ;;  %s2405_s21 = smov %s1805_s22 }
 0x37e   : > { %s2406_s22 = smov %s1809_s23  ;;  %s2407_s23 = smov %s1890_s30 }
 0x37f   : > { %s2408_s24 = smov %s1879_s27  ;;  %18 = sbr.rel (!%p16_p3) target bundleno = 3 (0x3), region = 79 }
 0x386   :  { %1410 = vsyncpa [#allocation3], 1 }
 0x387   :  { %1412 = vsyncpa [#allocation3 + $0x1], 1 }

</bundles_post_ra>
